<compile_context>
chip_gen: v5e
topology: v5e:2x2
jax: 0.10.0
libtpu: 0.0.40
codegen_flags: <defaults>
</compile_context>

<pallas_src>
import functools
import math

import jax
import jax.numpy as jnp
from jax.experimental import pallas as pl
from jax.experimental.pallas import tpu as pltpu

F32 = jnp.float32
BF16 = jnp.bfloat16
_VMEM_LIMIT = 48 * 1024 * 1024       # fits v7x (64 MiB) with headroom
_FULLK_BYTES = 24 * 1024 * 1024      # budget for double-buffered full-K slabs


# ----------------------------------------------------------------------------
# Tiling helpers
# ----------------------------------------------------------------------------
def _choose_tile(dim, target, align):
    """Largest divisor of `dim` <= target that is a multiple of `align`;
    falls back to the full dim (a full-extent block is always legal)."""
    if dim <= target:
        return dim
    start = (target // align) * align
    for t in range(start, 0, -align):
        if dim % t == 0:
            return t
    return dim


def _choose_tile_m(dim, target, align=8):
    """Row-tile that prefers >= 2 grid steps along the (only) parallel axis so
    both v7x TensorCores get work; falls back to the full dim for tiny M."""
    if dim >= 2 * align:
        target = min(target, dim // 2)
    return _choose_tile(dim, target, align)


def _heads_per_block(nh, dh, target_lanes=256):
    """Heads packed per attention grid step: lane width multiple of 128 and
    close to 256 (fills v6e/v7x MXU)."""
    valid = [hg for hg in range(1, nh + 1)
             if nh % hg == 0 and (hg * dh) % 128 == 0]
    if not valid:
        return nh
    le = [hg for hg in valid if hg * dh <= target_lanes]
    return max(le) if le else min(valid)


# ----------------------------------------------------------------------------
# In-kernel math helpers
# ----------------------------------------------------------------------------
def _erf_f32(z):
    # Rational erfc approximation (Numerical Recipes 6.2, |err| < 1.2e-7) built
    # from exp/mul/add only, so it lowers on every Pallas TPU backend while
    # matching HF BERT's exact-erf GELU numerics (well below bf16 noise).
    a = jnp.abs(z)
    t = 1.0 / (1.0 + 0.5 * a)
    poly = -1.26551223 + t * (1.00002368 + t * (0.37409196 + t * (0.09678418
           + t * (-0.18628806 + t * (0.27886807 + t * (-1.13520398
           + t * (1.48851587 + t * (-0.82215223 + t * 0.17087277))))))))
    erfc_a = t * jnp.exp(-a * a + poly)
    return jnp.where(z >= 0.0, 1.0 - erfc_a, erfc_a - 1.0)


def _apply_act(y, activation):
    if activation == "relu":
        return jnp.maximum(y, 0.0)
    if activation == "tanh":
        return jnp.tanh(y)
    if activation == "gelu":
        return 0.5 * y * (1.0 + _erf_f32(y * 0.7071067811865476))
    return y


# ----------------------------------------------------------------------------
# Dense kernels (bf16 weights / activations, f32 accumulation & epilogue)
# ----------------------------------------------------------------------------
def _dense_fullk_kernel(x_ref, w_ref, b_ref, o_ref, *, activation):
    y = jnp.dot(x_ref[...].astype(BF16), w_ref[...],
                preferred_element_type=jnp.float32) + b_ref[...]
    o_ref[...] = _apply_act(y, activation).astype(o_ref.dtype)


def _dense_ktile_kernel(x_ref, w_ref, b_ref, o_ref, acc_ref, *, activation):
    k = pl.program_id(2)

    @pl.when(k == 0)
    def _():
        acc_ref[...] = jnp.zeros_like(acc_ref)

    acc_ref[...] += jnp.dot(x_ref[...].astype(BF16), w_ref[...],
                            preferred_element_type=jnp.float32)

    @pl.when(k == pl.num_programs(2) - 1)
    def _():
        y = acc_ref[...] + b_ref[...]
        o_ref[...] = _apply_act(y, activation).astype(o_ref.dtype)


def dense(x, w, b, activation="none", out_dtype=BF16, *, tm=256, tn=512):
    """y = act(x @ w + b); x:[M,K] (bf16/f32), w:[K,N] bf16, b:[N] f32."""
    M, K = x.shape
    Kw, N = w.shape
    assert K == Kw
    if w.dtype != BF16:      # weights are pre-cast at init; this is a no-op
        w = w.astype(BF16)
    tm = _choose_tile(M, tm, 8)
    tn = _choose_tile(N, tn, 128)
    fullk = (K * tn + tm * K) * 2 * 2 <= _FULLK_BYTES   # bf16, double-buffered
    if fullk:
        return pl.pallas_call(
            functools.partial(_dense_fullk_kernel, activation=activation),
            out_shape=jax.ShapeDtypeStruct((M, N), out_dtype),
            grid_spec=pltpu.PrefetchScalarGridSpec(
                num_scalar_prefetch=0,
                grid=(M // tm, N // tn),
                in_specs=[
                    pl.BlockSpec((tm, K), lambda i, j: (i, 0)),
                    pl.BlockSpec((K, tn), lambda i, j: (0, j)),
                    pl.BlockSpec((1, tn), lambda i, j: (0, j)),
                ],
                out_specs=pl.BlockSpec((tm, tn), lambda i, j: (i, j)),
            ),
            compiler_params=pltpu.CompilerParams(
                dimension_semantics=("parallel", "parallel"),
                vmem_limit_bytes=_VMEM_LIMIT),
        )(x, w, b.reshape(1, N))
    # Fallback: k-tiled with an f32 VMEM accumulator (output is bf16).
    tk = _choose_tile(K, 512, 128)
    return pl.pallas_call(
        functools.partial(_dense_ktile_kernel, activation=activation),
        out_shape=jax.ShapeDtypeStruct((M, N), out_dtype),
        grid_spec=pltpu.PrefetchScalarGridSpec(
            num_scalar_prefetch=0,
            grid=(M // tm, N // tn, K // tk),
            in_specs=[
                pl.BlockSpec((tm, tk), lambda i, j, k: (i, k)),
                pl.BlockSpec((tk, tn), lambda i, j, k: (k, j)),
                pl.BlockSpec((1, tn), lambda i, j, k: (0, j)),
            ],
            out_specs=pl.BlockSpec((tm, tn), lambda i, j, k: (i, j)),
            scratch_shapes=[pltpu.VMEM((tm, tn), jnp.float32)],
        ),
        compiler_params=pltpu.CompilerParams(
            dimension_semantics=("parallel", "parallel", "arbitrary"),
            vmem_limit_bytes=_VMEM_LIMIT),
    )(x, w, b.reshape(1, N))


def _dense_add_ln_fullk_kernel(x_ref, w_ref, b_ref, r_ref, g_ref, be_ref,
                               o_ref, *, eps):
    y = jnp.dot(x_ref[...].astype(BF16), w_ref[...],
                preferred_element_type=jnp.float32)
    y = y + b_ref[...] + r_ref[...].astype(jnp.float32)
    mu = jnp.mean(y, axis=-1, keepdims=True)
    yc = y - mu
    var = jnp.mean(yc * yc, axis=-1, keepdims=True)
    yn = yc * jax.lax.rsqrt(var + eps)
    o_ref[...] = (yn * g_ref[...] + be_ref[...]).astype(o_ref.dtype)


def _dense_add_ln_ktile_kernel(x_ref, w_ref, b_ref, r_ref, g_ref, be_ref,
                               o_ref, acc_ref, *, eps):
    k = pl.program_id(1)

    @pl.when(k == 0)
    def _():
        acc_ref[...] = jnp.zeros_like(acc_ref)

    acc_ref[...] += jnp.dot(x_ref[...].astype(BF16), w_ref[...],
                            preferred_element_type=jnp.float32)

    @pl.when(k == pl.num_programs(1) - 1)
    def _():
        y = acc_ref[...] + b_ref[...] + r_ref[...].astype(jnp.float32)
        mu = jnp.mean(y, axis=-1, keepdims=True)
        yc = y - mu
        var = jnp.mean(yc * yc, axis=-1, keepdims=True)
        yn = yc * jax.lax.rsqrt(var + eps)
        o_ref[...] = (yn * g_ref[...] + be_ref[...]).astype(o_ref.dtype)


def dense_add_ln(x, w, b, res, gamma, beta, eps=1e-12, out_dtype=BF16, *, tm=256):
    """LayerNorm(x @ w + b + res); output feature axis N is kept un-tiled (full
    H) so the LayerNorm reduction fuses into the dense epilogue."""
    M, K = x.shape
    Kw, N = w.shape
    assert K == Kw and res.shape == (M, N)
    if w.dtype != BF16:
        w = w.astype(BF16)
    tm = _choose_tile_m(M, tm, 8)     # >=2 parallel steps when possible (v7x)
    fullk = (K * N + tm * K) * 2 * 2 <= _FULLK_BYTES
    operands = (x, w, b.reshape(1, N), res, gamma.reshape(1, N),
                beta.reshape(1, N))
    if fullk:
        return pl.pallas_call(
            functools.partial(_dense_add_ln_fullk_kernel, eps=eps),
            out_shape=jax.ShapeDtypeStruct((M, N), out_dtype),
            grid_spec=pltpu.PrefetchScalarGridSpec(
                num_scalar_prefetch=0,
                grid=(M // tm,),
                in_specs=[
                    pl.BlockSpec((tm, K), lambda i: (i, 0)),
                    pl.BlockSpec((K, N), lambda i: (0, 0)),
                    pl.BlockSpec((1, N), lambda i: (0, 0)),
                    pl.BlockSpec((tm, N), lambda i: (i, 0)),
                    pl.BlockSpec((1, N), lambda i: (0, 0)),
                    pl.BlockSpec((1, N), lambda i: (0, 0)),
                ],
                out_specs=pl.BlockSpec((tm, N), lambda i: (i, 0)),
            ),
            compiler_params=pltpu.CompilerParams(
                dimension_semantics=("parallel",),
                vmem_limit_bytes=_VMEM_LIMIT),
        )(*operands)
    tk = _choose_tile(K, 512, 128)
    return pl.pallas_call(
        functools.partial(_dense_add_ln_ktile_kernel, eps=eps),
        out_shape=jax.ShapeDtypeStruct((M, N), out_dtype),
        grid_spec=pltpu.PrefetchScalarGridSpec(
            num_scalar_prefetch=0,
            grid=(M // tm, K // tk),
            in_specs=[
                pl.BlockSpec((tm, tk), lambda i, k: (i, k)),
                pl.BlockSpec((tk, N), lambda i, k: (k, 0)),
                pl.BlockSpec((1, N), lambda i, k: (0, 0)),
                pl.BlockSpec((tm, N), lambda i, k: (i, 0)),
                pl.BlockSpec((1, N), lambda i, k: (0, 0)),
                pl.BlockSpec((1, N), lambda i, k: (0, 0)),
            ],
            out_specs=pl.BlockSpec((tm, N), lambda i, k: (i, 0)),
            scratch_shapes=[pltpu.VMEM((tm, N), jnp.float32)],
        ),
        compiler_params=pltpu.CompilerParams(
            dimension_semantics=("parallel", "arbitrary"),
            vmem_limit_bytes=_VMEM_LIMIT),
    )(*operands)


# ----------------------------------------------------------------------------
# LayerNorm (embeddings)
# ----------------------------------------------------------------------------
def _ln_kernel(x_ref, g_ref, b_ref, o_ref, *, eps):
    x = x_ref[...].astype(jnp.float32)
    mu = jnp.mean(x, axis=-1, keepdims=True)
    xc = x - mu
    var = jnp.mean(xc * xc, axis=-1, keepdims=True)
    o_ref[...] = (xc * jax.lax.rsqrt(var + eps) * g_ref[...]
                  + b_ref[...]).astype(o_ref.dtype)


def layernorm(x, gamma, beta, eps=1e-12, out_dtype=BF16, *, tm=512):
    M, H = x.shape
    tm = _choose_tile_m(M, tm, 8)
    return pl.pallas_call(
        functools.partial(_ln_kernel, eps=eps),
        out_shape=jax.ShapeDtypeStruct((M, H), out_dtype),
        grid_spec=pltpu.PrefetchScalarGridSpec(
            num_scalar_prefetch=0,
            grid=(M // tm,),
            in_specs=[
                pl.BlockSpec((tm, H), lambda i: (i, 0)),
                pl.BlockSpec((1, H), lambda i: (0, 0)),
                pl.BlockSpec((1, H), lambda i: (0, 0)),
            ],
            out_specs=pl.BlockSpec((tm, H), lambda i: (i, 0)),
        ),
        compiler_params=pltpu.CompilerParams(
            dimension_semantics=("parallel",),
            vmem_limit_bytes=_VMEM_LIMIT),
    )(x, gamma.reshape(1, H), beta.reshape(1, H))


# ----------------------------------------------------------------------------
# Multi-head self-attention on the fused QKV projection
# ----------------------------------------------------------------------------
def _attn_kernel(q_ref, k_ref, v_ref, m_ref, o_ref, *, hg, dh):
    m = m_ref[...]                    # (1, S) additive key mask (broadcasts)
    ctxs = []
    for h in range(hg):               # static unroll over packed heads
        lo, hi = h * dh, (h + 1) * dh
        q = q_ref[:, lo:hi].astype(BF16)   # 1/sqrt(dh) folded into W_Q at init
        k = k_ref[:, lo:hi].astype(BF16)
        v = v_ref[:, lo:hi].astype(BF16)
        s = jnp.einsum("qd,kd->qk", q, k, preferred_element_type=jnp.float32)
        s = s + m
        mx = jnp.max(s, axis=-1, keepdims=True)
        p = jnp.exp(s - mx)
        denom = jnp.sum(p, axis=-1, keepdims=True)
        ctx = jnp.dot(p.astype(BF16), v, preferred_element_type=jnp.float32)
        # Normalize after PV (O(S*dh)); reciprocal runs on the EUP slot.
        ctxs.append(ctx * pl.reciprocal(denom, approx=True))
    # Single lane-dense store of the whole (S, hg*dh) block.
    o_ref[...] = jnp.concatenate(ctxs, axis=-1).astype(o_ref.dtype)


def attention(qkv, add_mask, B, S, nh, dh):
    """qkv: [B*S, 3H] (bf16, columns = [Q heads | K heads | V heads]);
    add_mask: [B, 1, S] additive mask; returns [B*S, H] bf16 context."""
    H = nh * dh
    hg = _heads_per_block(nh, dh)
    ng = nh // hg
    assert S % 8 == 0 or B == 1, "sequence length must be a multiple of 8"
    # TODO(synk): for long S add a KV grid axis with online softmax
    # (flash-style running max/sum) to bound VMEM on v7x.
    return pl.pallas_call(
        functools.partial(_attn_kernel, hg=hg, dh=dh),
        out_shape=jax.ShapeDtypeStruct((B * S, H), BF16),
        grid_spec=pltpu.PrefetchScalarGridSpec(
            num_scalar_prefetch=0,
            grid=(B, ng),
            in_specs=[
                pl.BlockSpec((S, hg * dh), lambda b, g: (b, g)),           # Q
                pl.BlockSpec((S, hg * dh), lambda b, g: (b, ng + g)),      # K
                pl.BlockSpec((S, hg * dh), lambda b, g: (b, 2 * ng + g)),  # V
                pl.BlockSpec((None, 1, S), lambda b, g: (b, 0, 0)),        # mask
            ],
            out_specs=pl.BlockSpec((S, hg * dh), lambda b, g: (b, g)),
        ),
        compiler_params=pltpu.CompilerParams(
            dimension_semantics=("parallel", "parallel"),
            vmem_limit_bytes=_VMEM_LIMIT),
    )(qkv, qkv, qkv, add_mask)


# ----------------------------------------------------------------------------
# InfoNCE (projected cosine similarity, LogSoftmax over dim 0)
# ----------------------------------------------------------------------------
def _infonce_kernel(s_ref, t_ref, o_ref, *, temperature):
    s = s_ref[...].astype(jnp.float32)
    t = t_ref[...].astype(jnp.float32)
    sn = s / jnp.maximum(jnp.sqrt(jnp.sum(s * s, axis=-1, keepdims=True)), 1e-12)
    tn = t / jnp.maximum(jnp.sqrt(jnp.sum(t * t, axis=-1, keepdims=True)), 1e-12)
    f = jnp.einsum("if,jf->ij", sn, tn,
                   preferred_element_type=jnp.float32) / temperature
    mx = jnp.max(f, axis=0, keepdims=True)          # LogSoftmax over dim 0
    z = f - mx
    lsm = z - jnp.log(jnp.sum(jnp.exp(z), axis=0, keepdims=True))
    bs = f.shape[0]
    rows = jax.lax.broadcasted_iota(jnp.int32, (bs, bs), 0)
    cols = jax.lax.broadcasted_iota(jnp.int32, (bs, bs), 1)
    diag = jnp.sum(jnp.where(rows == cols, lsm, 0.0))
    o_ref[0, 0] = -diag / bs


def infonce_loss(fea_stu, fea_tea, temperature):
    bs, Fdim = fea_stu.shape
    out = pl.pallas_call(
        functools.partial(_infonce_kernel, temperature=temperature),
        out_shape=jax.ShapeDtypeStruct((1, 1), jnp.float32),
        grid_spec=pltpu.PrefetchScalarGridSpec(
            num_scalar_prefetch=0,
            grid=(1,),
            in_specs=[
                pl.BlockSpec((bs, Fdim), lambda i: (0, 0)),
                pl.BlockSpec((bs, Fdim), lambda i: (0, 0)),
            ],
            out_specs=pl.BlockSpec((1, 1), lambda i: (0, 0)),
        ),
        compiler_params=pltpu.CompilerParams(vmem_limit_bytes=_VMEM_LIMIT),
    )(fea_stu, fea_tea)
    return out[0, 0]


# ----------------------------------------------------------------------------
# Parameter initialisation (deterministic, synthetic)
# ----------------------------------------------------------------------------
class _KeyGen:
    def __init__(self, key):
        self.key = key

    def __call__(self):
        self.key, sub = jax.random.split(self.key)
        return sub


def _w(kg, shape, scale=0.02):
    return (scale * jax.random.normal(kg(), shape)).astype(F32)


def init_bert_params(key, cfg):
    kg = _KeyGen(key)
    H, I = cfg["hidden"], cfg["inter"]
    dh = cfg["head_dim"]
    p = {
        "word_emb": _w(kg, (cfg["vocab"], H)),
        "pos_emb": _w(kg, (cfg["max_pos"], H)),
        "type_emb": _w(kg, (cfg["type_vocab"], H)),
        "emb_ln_g": jnp.ones((H,), F32),
        "emb_ln_b": jnp.zeros((H,), F32),
        "pooler_w": _w(kg, (H, H)).astype(BF16),
        "pooler_b": jnp.zeros((H,), F32),
        "layers": [],
    }
    # Fold 1/sqrt(dh) into the Q projection (identical math to dividing QK^T).
    scale_cols = jnp.concatenate(
        [jnp.full((H,), 1.0 / math.sqrt(dh), F32), jnp.ones((2 * H,), F32)])
    for _ in range(cfg["layers"]):
        qkv_w = _w(kg, (H, 3 * H)) * scale_cols[None, :]
        qkv_b = jnp.zeros((3 * H,), F32) * scale_cols
        lp = {
            # Q|K|V fused along the output axis: one [H, 3H] matmul per layer.
            "qkv_w": qkv_w.astype(BF16), "qkv_b": qkv_b,
            "o_w": _w(kg, (H, H)).astype(BF16), "o_b": jnp.zeros((H,), F32),
            "ln1_g": jnp.ones((H,), F32), "ln1_b": jnp.zeros((H,), F32),
            "i_w": _w(kg, (H, I)).astype(BF16), "i_b": jnp.zeros((I,), F32),
            "fo_w": _w(kg, (I, H)).astype(BF16), "fo_b": jnp.zeros((H,), F32),
            "ln2_g": jnp.ones((H,), F32), "ln2_b": jnp.zeros((H,), F32),
        }
        p["layers"].append(lp)
    return p


def init_mlp(key, dims):
    kg = _KeyGen(key)
    layers = []
    for d_in, d_out in zip(dims[:-1], dims[1:]):
        layers.append({"w": _w(kg, (d_in, d_out)).astype(BF16),
                       "b": jnp.zeros((d_out,), F32)})
    return layers


def init_advbertkd_params(key, cfg, label_size):
    kg = _KeyGen(key)
    return {
        "bert_stu": init_bert_params(kg(), cfg),
        "bert_tea": init_bert_params(kg(), cfg),
        "t_stu_gy": [init_mlp(kg(), [768, 512, 256]) for _ in range(label_size)],
        "t_tea_gy": [init_mlp(kg(), [768, 512, 256]) for _ in range(label_size)],
        "rp_stu": init_mlp(kg(), [768, 256, label_size]),
        "rp_tea": init_mlp(kg(), [768, 256, label_size]),
    }


# ----------------------------------------------------------------------------
# Model forward (glue in plain JAX, hot paths in Pallas)
# ----------------------------------------------------------------------------
def mlp2(layers, x, hidden_act="relu"):
    """Sequential(Linear, ReLU, Linear) style head (final output f32)."""
    h = dense(x, layers[0]["w"], layers[0]["b"], activation=hidden_act)
    return dense(h, layers[1]["w"], layers[1]["b"], activation="none",
                 out_dtype=F32)


def bert_embeddings(bp, input_ids, token_type_ids):
    B, S = input_ids.shape
    H = bp["word_emb"].shape[-1]
    we = jnp.take(bp["word_emb"], input_ids, axis=0)
    pe = bp["pos_emb"][:S][None, :, :]
    te = jnp.take(bp["type_emb"], token_type_ids, axis=0)
    x = (we + pe + te).reshape(B * S, H)
    x = layernorm(x, bp["emb_ln_g"], bp["emb_ln_b"])   # -> bf16
    return x.reshape(B, S, H)


def bert_layer_2d(lp, x2, add_mask, B, S, cfg):
    """One encoder layer on the flat [B*S, H] layout (bf16 activations)."""
    nh, dh = cfg["num_heads"], cfg["head_dim"]
    qkv = dense(x2, lp["qkv_w"], lp["qkv_b"])                 # [B*S, 3H] bf16
    ctx = attention(qkv, add_mask, B, S, nh, dh)              # [B*S, H]  bf16
    h1 = dense_add_ln(ctx, lp["o_w"], lp["o_b"], x2, lp["ln1_g"], lp["ln1_b"])
    inter = dense(h1, lp["i_w"], lp["i_b"], activation="gelu")
    h2 = dense_add_ln(inter, lp["fo_w"], lp["fo_b"], h1, lp["ln2_g"], lp["ln2_b"])
    return h2


def bert_from_embeds(bp, embd, attention_mask, cfg):
    """Returns (sequence_output [B,S,H] bf16, pooled_output [B,H] bf16)."""
    B, S, H = embd.shape
    # get_extended_attention_mask: (1 - mask) * -10000; kept un-broadcast (B,1,S)
    add_mask = ((1.0 - attention_mask.astype(F32)) * -10000.0).reshape(B, 1, S)
    x = embd.reshape(B * S, H)
    for lp in bp["layers"]:
        x = bert_layer_2d(lp, x, add_mask, B, S, cfg)
    seq = x.reshape(B, S, H)
    pooled = dense(seq[:, 0, :], bp["pooler_w"], bp["pooler_b"], activation="tanh")
    return seq, pooled


def text_to_embd(bp, input_ids, token_type_ids):
    # BertModel_forward_modified with input_ids returns the embedding output only.
    return bert_embeddings(bp, input_ids, token_type_ids)


def embd_to_logit(params, which, embd, attention_mask, cfg):
    bp = params["bert_stu"] if which == "stu" else params["bert_tea"]
    head = params["rp_stu"] if which == "stu" else params["rp_tea"]
    _, pooled = bert_from_embeds(bp, embd, attention_mask, cfg)
    return mlp2(head, pooled)


def embd_to_infonce(params, embd_stu, embd_tea, attention_mask, cfg, y,
                    temperature=0.2):
    _, pooled_stu = bert_from_embeds(params["bert_stu"], embd_stu,
                                     attention_mask, cfg)
    _, pooled_tea = bert_from_embeds(params["bert_tea"], embd_tea,
                                     attention_mask, cfg)
    fea_stu = mlp2(params["t_stu_gy"][y], pooled_stu)
    fea_tea = mlp2(params["t_tea_gy"][y], pooled_tea)
    return infonce_loss(fea_stu, fea_tea, temperature)


def advbertkd_forward(params, cfg, label_size, mode, inp, bert_mask=None,
                      bert_token_id=None, orig_text_for_info=None):
    if mode == "text_to_embd":
        return text_to_embd(params["bert_stu"], inp, bert_token_id)
    if mode == "text_to_embd_tea":
        return text_to_embd(params["bert_tea"], inp, bert_token_id)
    if mode == "embd_to_logit":
        return embd_to_logit(params, "stu", inp, bert_mask, cfg)
    if mode == "embd_to_logit_tea":
        return embd_to_logit(params, "tea", inp, bert_mask, cfg)
    if mode == "text_to_logit":
        embd = text_to_embd(params["bert_stu"], inp, bert_token_id)
        return embd_to_logit(params, "stu", embd, bert_mask, cfg)
    if mode == "text_to_logit_tea":
        embd = text_to_embd(params["bert_tea"], inp, bert_token_id)
        return embd_to_logit(params, "tea", embd, bert_mask, cfg)
    if mode == "text_to_infonce_giveny":
        n = inp.shape[0]
        bs_per_y = n // label_size
        embd = text_to_embd(params["bert_stu"], inp, bert_token_id)
        embd_tea = text_to_embd(params["bert_tea"], orig_text_for_info,
                                bert_token_id)
        loss = 0.0
        for i in range(label_size):
            sl = slice(i * bs_per_y, (i + 1) * bs_per_y)
            loss = loss + embd_to_infonce(params, embd[sl], embd_tea[sl],
                                          bert_mask[sl], cfg, y=i)
        return loss / label_size
    if mode == "params_l2":
        # plain-JAX glue reduction over matching student/teacher BERT params
        diffs = jax.tree_util.tree_map(
            lambda a, b: jnp.sum((a.astype(F32) - b.astype(F32)) ** 2),
            params["bert_stu"], params["bert_tea"])
        total = sum(jax.tree_util.tree_leaves(diffs))
        return jnp.sqrt(1e-10 + total)
    raise NotImplementedError(mode)


# ----------------------------------------------------------------------------
if __name__ == "__main__":
    # Small BERT-like config (hidden must be 768 because the projection heads
    # are hard-coded to 768 in the PyTorch module); 2 encoder layers for speed.
    cfg = dict(vocab=100, hidden=768, layers=2, num_heads=12, head_dim=64,
               inter=3072, max_pos=64, type_vocab=2)
    label_size = 2
    B, S = 4, 8

    root = jax.random.PRNGKey(0)
    pkey, dkey = jax.random.split(root)
    params = init_advbertkd_params(pkey, cfg, label_size)

    k1, k2 = jax.random.split(dkey)
    input_ids = jax.random.randint(k1, (B, S), 0, cfg["vocab"], dtype=jnp.int32)
    orig_ids = jax.random.randint(k2, (B, S), 0, cfg["vocab"], dtype=jnp.int32)
    token_type_ids = jnp.zeros((B, S), jnp.int32)
    bert_mask = jnp.ones((B, S), F32)

    logits = advbertkd_forward(params, cfg, label_size, "text_to_logit",
                               input_ids, bert_mask=bert_mask,
                               bert_token_id=token_type_ids)
    info_loss = advbertkd_forward(params, cfg, label_size,
                                  "text_to_infonce_giveny", input_ids,
                                  bert_mask=bert_mask,
                                  bert_token_id=token_type_ids,
                                  orig_text_for_info=orig_ids)
    l2 = advbertkd_forward(params, cfg, label_size, "params_l2", None)

    jax.block_until_ready((logits, info_loss, l2))
    assert logits.shape == (B, label_size)
    print("KERNEL_OK")
</pallas_src>

<mosaic_0001>
module attributes {stable_mosaic.version = 11 : i64} {
  func.func @_ln_kernel(%arg0: i32, %arg1: memref<16x768xf32, #tpu.memory_space<vmem>>, %arg2: memref<1x768xf32, #tpu.memory_space<vmem>>, %arg3: memref<1x768xf32, #tpu.memory_space<vmem>>, %arg4: memref<16x768xbf16, #tpu.memory_space<vmem>>) attributes {dimension_semantics = [#tpu.dimension_semantics<parallel>], iteration_bounds = array<i64: 2>, scalar_prefetch = 0 : i64, scratch_operands = 0 : i64, tpu.core_type = #tpu.core_type<tc>, window_params = [{transform_indices = @transform_0, window_bounds = array<i64: 16, 768>}, {pipeline_mode = #tpu.pipeline_mode<synchronous>, transform_indices = @transform_1, window_bounds = array<i64: 1, 768>}, {pipeline_mode = #tpu.pipeline_mode<synchronous>, transform_indices = @transform_2, window_bounds = array<i64: 1, 768>}, {transform_indices = @transform_3, window_bounds = array<i64: 16, 768>}]} {
    %c0 = arith.constant 0 : index
    %c0_0 = arith.constant 0 : index
    %0 = vector.load %arg1[%c0, %c0_0] : memref<16x768xf32, #tpu.memory_space<vmem>>, vector<16x768xf32>
    %cst = arith.constant dense<0.000000e+00> : vector<16xf32>
    %1 = vector.multi_reduction <add>, %0, %cst [1] : vector<16x768xf32> to vector<16xf32>
    %2 = vector.shape_cast %1 : vector<16xf32> to vector<16x1xf32>
    %cst_1 = arith.constant 7.680000e+02 : f32
    %3 = vector.broadcast %cst_1 : f32 to vector<16x1xf32>
    %4 = arith.divf %2, %3 : vector<16x1xf32>
    %5 = vector.broadcast %4 : vector<16x1xf32> to vector<16x768xf32>
    %6 = arith.subf %0, %5 : vector<16x768xf32>
    %7 = arith.mulf %6, %6 : vector<16x768xf32>
    %cst_2 = arith.constant dense<0.000000e+00> : vector<16xf32>
    %8 = vector.multi_reduction <add>, %7, %cst_2 [1] : vector<16x768xf32> to vector<16xf32>
    %9 = vector.shape_cast %8 : vector<16xf32> to vector<16x1xf32>
    %cst_3 = arith.constant 7.680000e+02 : f32
    %10 = vector.broadcast %cst_3 : f32 to vector<16x1xf32>
    %11 = arith.divf %9, %10 : vector<16x1xf32>
    %cst_4 = arith.constant 9.99999996E-13 : f32
    %12 = vector.broadcast %cst_4 : f32 to vector<16x1xf32>
    %13 = arith.addf %11, %12 : vector<16x1xf32>
    %14 = math.rsqrt %13 : vector<16x1xf32>
    %15 = vector.broadcast %14 : vector<16x1xf32> to vector<16x768xf32>
    %16 = arith.mulf %6, %15 : vector<16x768xf32>
    %c0_5 = arith.constant 0 : index
    %c0_6 = arith.constant 0 : index
    %17 = vector.load %arg2[%c0_5, %c0_6] : memref<1x768xf32, #tpu.memory_space<vmem>>, vector<1x768xf32>
    %18 = vector.broadcast %17 : vector<1x768xf32> to vector<16x768xf32>
    %19 = arith.mulf %16, %18 : vector<16x768xf32>
    %c0_7 = arith.constant 0 : index
    %c0_8 = arith.constant 0 : index
    %20 = vector.load %arg3[%c0_7, %c0_8] : memref<1x768xf32, #tpu.memory_space<vmem>>, vector<1x768xf32>
    %21 = vector.broadcast %20 : vector<1x768xf32> to vector<16x768xf32>
    %22 = arith.addf %19, %21 : vector<16x768xf32>
    %23 = arith.truncf %22 : vector<16x768xf32> to vector<16x768xbf16>
    %c0_9 = arith.constant 0 : index
    %c0_10 = arith.constant 0 : index
    %24 = vector.load %arg4[%c0_9, %c0_10] : memref<16x768xbf16, #tpu.memory_space<vmem>>, vector<16x768xbf16>
    tpu.vector_store %arg4[%c0_9, %c0_10], %23 {strides = array<i32>} : memref<16x768xbf16, #tpu.memory_space<vmem>>, vector<16x768xbf16>,
    return
  }
  func.func @transform_0(%arg0: i32) -> (i32, i32) {
    %c0_i32 = arith.constant 0 : i32
    %c0_i32_0 = arith.constant 0 : i32
    return %arg0, %c0_i32 : i32, i32
  }
  func.func @transform_1(%arg0: i32) -> (i32, i32) {
    %c0_i32 = arith.constant 0 : i32
    %c0_i32_0 = arith.constant 0 : i32
    %c0_i32_1 = arith.constant 0 : i32
    return %c0_i32, %c0_i32_0 : i32, i32
  }
  func.func @transform_2(%arg0: i32) -> (i32, i32) {
    %c0_i32 = arith.constant 0 : i32
    %c0_i32_0 = arith.constant 0 : i32
    %c0_i32_1 = arith.constant 0 : i32
    return %c0_i32, %c0_i32_0 : i32, i32
  }
  func.func @transform_3(%arg0: i32) -> (i32, i32) {
    %c0_i32 = arith.constant 0 : i32
    %c0_i32_0 = arith.constant 0 : i32
    return %arg0, %c0_i32 : i32, i32
  }
}

</mosaic_0001>

<bundles_post_ra>
// kernel: tpu_custom_call.1
= control target key start
LH: loop header
LB: loop body
LE: loop exit
PB: predicated region body
PF: predicated region fallthrough
CT: control target
= control target key end

     0   :  { %8 = vsyncpa [#allocation3], 0  ;;  %s1024_s0 = inlined_call_operand.hbm [shape: f32[32,768], index: 0, kind: input, shape index: {}]   ;;  %s1025_s1 = inlined_call_operand.hbm [shape: f32[1,768], index: 1, kind: input, shape index: {}]   ;;  %s1026_s2 = inlined_call_operand.hbm [shape: f32[1,768], index: 2, kind: input, shape index: {}]   ;;  %s1027_s3 = inlined_call_operand.hbm [shape: bf16[32,768], index: 3, kind: output, shape index: {}]  }
   0x1   :  { %10 = vsyncpa [#allocation3 + $0x1], 0 }
   0x2   :  { %11 = vsyncpa [#allocation6], 0 }
   0x3   :  { %12 = vsyncpa [#allocation4], 0 }
   0x4   :  { %14 = vsyncpa [#allocation4 + $0x1], 0  ;;  %s793_s12 = smov 0   ;;  %s795_s13 = smov 0  }
   0x5   :  { %s797_s14 = smov 0   ;;  %s799_s15 = smov 0  }
   0x6 LB: > { %s814_s16 = sadd.s32 4294967295, %s764_s15   ;;  %s505_s17 = sadd.s32 4294967294, %s764_s15   ;;  %s764_s15 = sphi %s799_s15, %s1038_s15   ;;  %s760_s14 = sphi %s797_s14, %s1037_s14   ;;  %s756_s13 = sphi %s795_s13, %s1036_s13   ;;  %s752_s12 = sphi %s793_s12, %s1035_s12  }
   0x7   : > { %s818_s18 = sadd.s32 1, %s764_s15   ;;  %s27_s19 = sadd.s32 1, %s760_s14 }
   0x8   : > { %s24_s20 = ssub.s32 %s764_s15, %s818_s18  ;;  %p34_p0 = scmp.ne.s32.totalorder %s760_s14, %s756_s13 }
   0x9   : > { %p25_p1 = scmp.eq.s32.totalorder %s24_s20, 0  ;;  %p35_p2 = scmp.eq.s32.totalorder %s764_s15, 0 }
   0xa   : > { %p40_p3 = scmp.ne.s32.totalorder %s756_s13, %s752_s12  ;;  %p41_p4 = scmp.eq.s32.totalorder %s814_s16, 0 }
   0xb   : > { %s830_s21 = scalar_select %p25_p1, %s760_s14, %s27_s19  }
   0xc   : > { %p832_p5 = por %p35_p2, %p34_p0  ;;  %p838_p6 = por %p41_p4, %p40_p3 }
   0xd   : > { %p106_p7 = scmp.eq.s32.totalorder %s814_s16, 1  ;;  %p112_p8 = scmp.eq.s32.totalorder %s505_s17, 1 }
   0xe   : > { %p506_p9 = scmp.ge.s32.totalorder %s764_s15, 1  ;;  %p119_p10 = scmp.lt.s32.totalorder %s764_s15, 3 }
   0xf   : > { %p845_p11 = por %p106_p7, %p34_p0  ;;  %p849_p12 = por %p112_p8, %p40_p3 }
  0x10   : > { %p853_p13 = pnand %p506_p9, %p119_p10  ;;  %s131_s29 = sshll.u32 %s1025_s1, 4  ;;  %s132_s29 = int_to_ptr.hbm [resolvable:$true] %s131_s29 }
  0x11   : > { %s766_s30 = smov [#allocation5]   ;;  %p555_p3 = scmp.lt.s32.totalorder %s764_s15, 2 }
  0x12   : > { %p538_p1 = pneg %p853_p13  ;;  %s133_s4 = sshll.u32 %s766_s30, 4  ;;  %s134_s4 = int_to_ptr.vmem [resolvable:$true] %s133_s4 }
  0x13   : > { %s143_s7 = sshll.u32 %s1026_s2, 4  ;;  %p871_p7 = pnand %p555_p3, %p832_p5  ;;  %s144_s7 = int_to_ptr.hbm [resolvable:$true] %s143_s7 }
  0x14   : > { %p539_p2 = pnand %p538_p1, %p41_p4  ;;  %s767_s9 = smov [#allocation7]  }
  0x15   : > { %s145_s10 = sshll.u32 %s767_s9, 4  ;;  %s156_s11 = sand.u32 1, %s760_s14   ;;  %s146_s10 = int_to_ptr.vmem [resolvable:$true] %s145_s10 }
  0x16   : > { %541 = dma.hbm_to_vmem [thread:$0]  (!%p539_p2), %s132_s29, 96, %s134_s4, [#allocation6]  }
  0x17   : > { %544 = dma.hbm_to_vmem [thread:$0]  (!%p539_p2), %s144_s7, 96, %s146_s10, [#allocation6]  }
  0x18   : > { %s521_s17 = smul.u32 96, %s156_s11  ;;  %s157_s22 = scalar_lea.sflag [#allocation3], %s156_s11 }
  0x19   : > { %s522_s19 = smul.u32 96, %s764_s15  ;;  %p668_p8 = pneg %p871_p7 }
  0x1a   : > { %s160_s30 = scalar_lea.vmem [#allocation2], %s521_s17  ;;  %s671_s10 = scalar_lea.hbm %s1024_s0, 192 }
  0x1b   : > { %s166_s28 = scalar_lea.hbm %s1024_s0, %s522_s19  ;;  %s169_s5 = sshll.u32 %s160_s30, 4  ;;  %s170_s5 = int_to_ptr.vmem [resolvable:$true] %s169_s5 }
  0x1c   : > { %s167_s29 = sshll.u32 %s166_s28, 4  ;;  %s168_s29 = int_to_ptr.hbm [resolvable:$true] %s167_s29 }
  0x1d   : > { %s664_s4 = sshra.s32 %s168_s29, 4  ;;  %s665_s4 = int_to_ptr.hbm [resolvable:$true] %s664_s4 }
  0x1e   : > { %s666_s6 = scalar_lea.hbm %s665_s4, 96  ;;  %p672_p1 = scmp.lt.s32.totalorder %s665_s4, %s1024_s0 }
  0x1f   : > { %p667_p5 = scmp.ne.s32.totalorder %s665_s4, %s666_s6  ;;  %p673_p2 = scmp.lt.s32.totalorder %s671_s10, %s666_s6 }
  0x21   : > { %p669_p9 = pnand %p668_p8, %p667_p5  ;;  %p674_p3 = por %p673_p2, %p672_p1 }
  0x23   : > { %p670_p10 = pneg %p669_p9 }
  0x25   : > { %p675_p0 = pnand %p674_p3, %p670_p10 }
  0x27   : > { %678 = shalt.err (!%p675_p0)
}
  0x28   : > { %s768_s11 = smov 768   ;;  %s769_s17 = smov 48  }
  0x29   : > { %548 = dma.hbm_to_vmem [thread:$0]  (!%p871_p7), %s168_s29, 1536, %s170_s5, %s157_s22, %s768_s11, %s768_s11, %s769_s17  }
  0x2a   : > { %181 = sbr.rel (%p853_p13) target bundleno = 353 (0x161), region = 32  ;;  %s893_s27 = sand.u32 (!%p853_p13), 1, %s756_s13  }
  0x2b   : > { %s523_s28 = smul.u32 (!%p853_p13), 96, %s893_s27  ;;  %s184_s30 = scalar_lea.sflag (!%p853_p13), [#allocation3], %s893_s27 }
  0x2d   : > { %s187_s4 = scalar_lea.vmem (!%p853_p13), [#allocation2], %s523_s28 }
  0x2f   : > { %739 = dma.done.wait (%p838_p6), %s184_s30, 1536  }
  0x30   : > { %741 = vsyncadd (%p838_p6), %s184_s30, 4294965760 }
  0x31   : > { %743 = dma.done.wait (%p41_p4), [#allocation6], 192  }
  0x32   : > { %745 = vsyncadd (%p41_p4), [#allocation6], 4294967104  ;;  %v223_v0 = vld [vmem:[%s187_s4] sm:$0xff]  ;;  %v224_v1 = vld [vmem:[%s187_s4 + $0x8] sm:$0xff]  ;;  %v770_v22 = vmov 768.0   ;;  %s524_s23 = smul.u32 48, %s893_s27 }
  0x33   : > { %v225_v2 = vld [vmem:[%s187_s4 + $0x10] sm:$0xff]  ;;  %v226_v3 = vld [vmem:[%s187_s4 + $0x18] sm:$0xff]  ;;  %v235_v4 = vadd.f32 %v224_v1, %v223_v0  ;;  %v231_v7 = vld [vmem:[%s187_s4 + $0x40] sm:$0xff]  ;;  %598 = vrcp.f32 %v770_v22  ;;  %s525_s26 = smul.u32 48, %s814_s16  ;;  %s397_s7 = scalar_lea.sflag [#allocation4], %s893_s27 }
  0x34   : > { %v229_v5 = vld [vmem:[%s187_s4 + $0x30] sm:$0xff]  ;;  %v230_v6 = vld [vmem:[%s187_s4 + $0x38] sm:$0xff]  ;;  %v227_v10 = vld [vmem:[%s187_s4 + $0x20] sm:$0xff]  ;;  %s977_s8 = scalar_lea.vmem [#allocation8], %s524_s23  ;;  %s714_s11 = scalar_lea.hbm %s1027_s3, 96 }
  0x35   : > { %v236_v8 = vadd.f32 %v235_v4, %v225_v2  ;;  %v242_v9 = vadd.f32 %v230_v6, %v229_v5  ;;  %v232_v11 = vld [vmem:[%s187_s4 + $0x48] sm:$0xff]  ;;  %v233_v17 = vld [vmem:[%s187_s4 + $0x50] sm:$0xff]  ;;  %v234_v20 = vld [vmem:[%s187_s4 + $0x58] sm:$0xff]  ;;  %s409_s29 = scalar_lea.hbm %s1027_s3, %s525_s26  ;;  %s410_s22 = sshll.u32 %s977_s8, 4  ;;  %s411_s22 = int_to_ptr.vmem [resolvable:$true] %s410_s22 }
  0x36   : > { %v228_v14 = vld [vmem:[%s187_s4 + $0x28] sm:$0xff]  ;;  %s412_s6 = sshll.u32 %s409_s29, 4  ;;  %s413_s6 = int_to_ptr.hbm [resolvable:$true] %s412_s6 }
  0x37   : > { %v237_v12 = vadd.f32 %v236_v8, %v226_v3  ;;  %v243_v13 = vadd.f32 %v242_v9, %v231_v7  ;;  %s708_s9 = sshra.s32 %s413_s6, 4  ;;  %s709_s9 = int_to_ptr.hbm [resolvable:$true] %s708_s9 }
  0x38   : > { %s710_s10 = scalar_lea.hbm %s709_s9, 48  ;;  %p715_p0 = scmp.lt.s32.totalorder %s709_s9, %s1027_s3 }
  0x39   : > { %v238_v15 = vadd.f32 %v237_v12, %v227_v10  ;;  %v244_v16 = vadd.f32 %v243_v13, %v232_v11  ;;  %v599_v23 = vpop.eup %598  ;;  %v953_v12 = vld [vmem:[#allocation5] sm:$0x3f]  ;;  %p711_p4 = scmp.ne.s32.totalorder %s709_s9, %s710_s10  ;;  %p716_p7 = scmp.lt.s32.totalorder %s714_s11, %s710_s10 }
  0x3a   : > { %v250_v24 = vmul.f32 768.0, %v599_v23  ;;  %vm254_vm0 = vweird.f32 %v599_v23 }
  0x3b   : > { %v239_v18 = vadd.f32 %v238_v15, %v228_v14  ;;  %v245_v19 = vadd.f32 %v244_v16, %v233_v17  ;;  %p712_p6 = pnand %p711_p4, %p845_p11  ;;  %p717_p5 = por %p716_p7, %p715_p0 }
  0x3c   : > { %v251_v25 = vsub.f32 1.0, %v250_v24  ;;  %v339_v24 = vperm.slane %v953_v12, 5 }
  0x3d   : > { %240 = vadd.xlane.f32.xlu0 %v239_v18  ;;  %v246_v21 = vadd.f32 %v245_v19, %v234_v20  ;;  %v335_v18 = vperm.slane %v953_v12, 1  ;;  %v336_v19 = vperm.slane %v953_v12, 2  ;;  %p713_p13 = pneg %p712_p6 }
  0x3e   : > { %v252_v26 = vmul.f32 %v599_v23, %v251_v25 }
  0x3f   : > { %p718_p8 = pnand %p717_p5, %p713_p13 }
  0x40   : > { %v253_v27 = vadd.f32 %v599_v23, %v252_v26 }
  0x42   : > { %v255_v28 = vsel %vm254_vm0, %v599_v23, %v253_v27 }
  0x45   : > { %247 = vadd.xlane.f32.xlu0 %v246_v21  ;;  %v338_v21 = vperm.slane %v953_v12, 4 }
  0xb0   : > { %v241_v29 = vpop.xlane.xlu0 %240 }
  0xb1   : > { %v256_v30 = vmul.f32 %v255_v28, %v241_v29 }
  0xb3   : > { %v905_v31 = vsub.f32 %v223_v0, %v256_v30  ;;  %v907_v32 = vsub.f32 %v224_v1, %v256_v30  ;;  %v909_v33 = vsub.f32 %v225_v2, %v256_v30  ;;  %v911_v34 = vsub.f32 %v226_v3, %v256_v30 }
  0xb4   : > { %v917_v37 = vsub.f32 %v227_v10, %v256_v30  ;;  %v921_v41 = vsub.f32 %v228_v14, %v256_v30  ;;  %v955_v14 = vld [vmem:[#allocation7] sm:$0x3f] }
  0xb5   : > { %v270_v35 = vmul.f32 %v905_v31, %v905_v31  ;;  %v271_v36 = vmul.f32 %v907_v32, %v907_v32  ;;  %v272_v38 = vmul.f32 %v909_v33, %v909_v33  ;;  %v273_v43 = vmul.f32 %v911_v34, %v911_v34 }
  0xb6   : > { %v274_v45 = vmul.f32 %v917_v37, %v917_v37  ;;  %v275_v50 = vmul.f32 %v921_v41, %v921_v41  ;;  %v360_v25 = vperm.slane %v955_v14, 0  ;;  %v361_v26 = vperm.slane %v955_v14, 1 }
  0xb7   : > { %v282_v39 = vadd.f32 %v271_v36, %v270_v35  ;;  %v362_v27 = vperm.slane %v955_v14, 2  ;;  %v364_v29 = vperm.slane %v955_v14, 4 }
  0xb8   : > { %v248_v40 = vpop.xlane.xlu0 %247 }
  0xb9   : > { %v257_v42 = vmul.f32 %v255_v28, %v248_v40  ;;  %v283_v44 = vadd.f32 %v282_v39, %v272_v38 }
  0xbb   : > { %v284_v46 = vadd.f32 %v283_v44, %v273_v43  ;;  %v927_v47 = vsub.f32 %v229_v5, %v257_v42  ;;  %v929_v48 = vsub.f32 %v230_v6, %v257_v42  ;;  %v931_v49 = vsub.f32 %v231_v7, %v257_v42 }
  0xbc   : > { %v935_v52 = vsub.f32 %v232_v11, %v257_v42  ;;  %v941_v56 = vsub.f32 %v233_v17, %v257_v42  ;;  %v945_v59 = vsub.f32 %v234_v20, %v257_v42  ;;  %v334_v17 = vperm.slane %v953_v12, 0 }
  0xbd   : > { %v285_v51 = vadd.f32 %v284_v46, %v274_v45  ;;  %v276_v53 = vmul.f32 %v927_v47, %v927_v47  ;;  %v277_v54 = vmul.f32 %v929_v48, %v929_v48  ;;  %v278_v57 = vmul.f32 %v931_v49, %v931_v49 }
  0xbe   : > { %v279_v60 = vmul.f32 %v935_v52, %v935_v52  ;;  %v280_v62 = vmul.f32 %v941_v56, %v941_v56  ;;  %v281_v0 = vmul.f32 %v945_v59, %v945_v59  ;;  %v337_v20 = vperm.slane %v953_v12, 3 }
  0xbf   : > { %v286_v55 = vadd.f32 %v285_v51, %v275_v50  ;;  %v289_v58 = vadd.f32 %v277_v54, %v276_v53  ;;  %v365_v42 = vperm.slane %v955_v14, 5 }
  0xc1   : > { %287 = vadd.xlane.f32.xlu1 %v286_v55  ;;  %v290_v61 = vadd.f32 %v289_v58, %v278_v57 }
  0xc3   : > { %v291_v63 = vadd.f32 %v290_v61, %v279_v60 }
  0xc5   : > { %v292_v1 = vadd.f32 %v291_v63, %v280_v62 }
  0xc7   : > { %v293_v2 = vadd.f32 %v292_v1, %v281_v0 }
  0xc9   : > { %294 = vadd.xlane.f32.xlu1 %v293_v2 }
 0x134   : > { %v288_v3 = vpop.xlane.xlu1 %287 }
 0x135   : > { %v296_v4 = vmul.f32 %v288_v3, %v255_v28 }
 0x137   : > { %v298_v5 = vadd.f32 1e-12, %v296_v4 }
 0x139   : > { %600 = vrsqrt.f32 %v298_v5  ;;  %vm306_vm2 = vweird.f32 %v298_v5 }
 0x13c   : > { %v295_v6 = vpop.xlane.xlu1 %294 }
 0x13d   : > { %v297_v7 = vmul.f32 %v295_v6, %v255_v28  ;;  %v363_v28 = vperm.slane %v955_v14, 3 }
 0x13f   : > { %v601_v8 = vpop.eup %600  ;;  %v299_v9 = vadd.f32 1e-12, %v297_v7 }
 0x140   : > { %v301_v10 = vmul.f32 %v601_v8, %v298_v5  ;;  %vm307_vm1 = vweird.f32 %v601_v8 }
 0x141   : > { %602 = vrsqrt.f32 %v299_v9  ;;  %vm308_vm3 = vmor %vm306_vm2, %vm307_vm1  ;;  %vm316_vm5 = vweird.f32 %v299_v9 }
 0x142   : > { %v302_v11 = vmul.f32 %v601_v8, %v301_v10 }
 0x144   : > { %v303_v13 = vmul.f32 0.5, %v302_v11 }
 0x146   : > { %v304_v15 = vsub.f32 1.5, %v303_v13 }
 0x147   : > { %v603_v16 = vpop.eup %602 }
 0x148   : > { %v305_v22 = vmul.f32 %v601_v8, %v304_v15  ;;  %v311_v23 = vmul.f32 %v603_v16, %v299_v9  ;;  %vm317_vm4 = vweird.f32 %v603_v16 }
 0x149   : > { %vm318_vm6 = vmor %vm316_vm5, %vm317_vm4 }
 0x14a   : > { %v309_v30 = vsel %vm308_vm3, %v601_v8, %v305_v22  ;;  %v312_v35 = vmul.f32 %v603_v16, %v311_v23 }
 0x14b   : > { %v320_v36 = vmul.f32 %v309_v30, %v905_v31  ;;  %v321_v38 = vmul.f32 %v309_v30, %v907_v32  ;;  %v322_v39 = vmul.f32 %v309_v30, %v909_v33  ;;  %v323_v40 = vmul.f32 %v309_v30, %v911_v34 }
 0x14c   : > { %v324_v43 = vmul.f32 %v309_v30, %v917_v37  ;;  %v325_v44 = vmul.f32 %v309_v30, %v921_v41  ;;  %v313_v45 = vmul.f32 0.5, %v312_v35 }
 0x14d   : > { %v346_v46 = vmul.f32 %v334_v17, %v320_v36  ;;  %v347_v50 = vmul.f32 %v335_v18, %v321_v38  ;;  %v348_v51 = vmul.f32 %v336_v19, %v322_v39  ;;  %v349_v53 = vmul.f32 %v337_v20, %v323_v40 }
 0x14e   : > { %v350_v31 = vmul.f32 %v338_v21, %v324_v43  ;;  %v351_v54 = vmul.f32 %v339_v24, %v325_v44  ;;  %v314_v32 = vsub.f32 1.5, %v313_v45 }
 0x14f   : > { %v372_v33 = vadd.f32 %v360_v25, %v346_v46  ;;  %v373_v55 = vadd.f32 %v361_v26, %v347_v50  ;;  %v374_v34 = vadd.f32 %v362_v27, %v348_v51  ;;  %v375_v57 = vadd.f32 %v363_v28, %v349_v53 }
 0x150   : > { %v376_v58 = vadd.f32 %v364_v29, %v350_v31  ;;  %v377_v60 = vadd.f32 %v365_v42, %v351_v54  ;;  %v315_v61 = vmul.f32 %v603_v16, %v314_v32 }
 0x151   : > { %v384_v37 = vpack.c.bf16 %v373_v55, %v372_v33  ;;  %v385_v41 = vpack.c.bf16 %v375_v57, %v374_v34 }
 0x152   : > { %v386_v62 = vpack.c.bf16 %v377_v60, %v376_v58  ;;  %v319_v63 = vsel %vm318_vm6, %v603_v16, %v315_v61 }
 0x153   : > { %390 = vst [vmem:[%s977_s8] sm:$0xff] %v384_v37  ;;  %v326_v0 = vmul.f32 %v319_v63, %v927_v47  ;;  %v327_v1 = vmul.f32 %v319_v63, %v929_v48  ;;  %v328_v2 = vmul.f32 %v319_v63, %v931_v49  ;;  %v329_v3 = vmul.f32 %v319_v63, %v935_v52 }
 0x154   : > { %391 = vst [vmem:[%s977_s8 + $0x8] sm:$0xff] %v385_v41  ;;  %v330_v4 = vmul.f32 %v319_v63, %v941_v56  ;;  %v331_v5 = vmul.f32 %v319_v63, %v945_v59 }
 0x155   : > { %392 = vst [vmem:[%s977_s8 + $0x10] sm:$0xff] %v386_v62  ;;  %v352_v6 = vmul.f32 %v334_v17, %v326_v0  ;;  %v353_v7 = vmul.f32 %v335_v18, %v327_v1  ;;  %v354_v47 = vmul.f32 %v336_v19, %v328_v2  ;;  %v355_v8 = vmul.f32 %v337_v20, %v329_v3 }
 0x156   : > { %v356_v48 = vmul.f32 %v338_v21, %v330_v4  ;;  %v357_v49 = vmul.f32 %v339_v24, %v331_v5 }
 0x157   : > { %v378_v52 = vadd.f32 %v360_v25, %v352_v6  ;;  %v379_v9 = vadd.f32 %v361_v26, %v353_v7  ;;  %v380_v56 = vadd.f32 %v362_v27, %v354_v47  ;;  %v381_v10 = vadd.f32 %v363_v28, %v355_v8 }
 0x158   : > { %v382_v59 = vadd.f32 %v364_v29, %v356_v48  ;;  %v383_v11 = vadd.f32 %v365_v42, %v357_v49 }
 0x159   : > { %v387_v12 = vpack.c.bf16 %v379_v9, %v378_v52  ;;  %v388_v13 = vpack.c.bf16 %v381_v10, %v380_v56 }
 0x15a   : > { %v389_v14 = vpack.c.bf16 %v383_v11, %v382_v59 }
 0x15b   : > { %393 = vst [vmem:[%s977_s8 + $0x18] sm:$0xff] %v387_v12 }
 0x15c   : > { %394 = vst [vmem:[%s977_s8 + $0x20] sm:$0xff] %v388_v13 }
 0x15d   : > { %395 = vst [vmem:[%s977_s8 + $0x28] sm:$0xff] %v389_v14 }
 0x15e   : > { %721 = shalt.err (!%p718_p8)
}
 0x15f   : > { %s771_s27 = smov 384   ;;  %s772_s30 = smov 24  }
 0x160   : > { %536 = dma.vmem_to_hbm [thread:$0]  (%p845_p11), %s411_s22, 768, %s413_s6, %s397_s7, %s771_s27, %s771_s27, %s772_s30  }
 0x161 PF: > { %s427_s4 = sand.u32 1, %s752_s12   ;;  %p1034_p9 = scmp.ge.s32.totalorder %s764_s15, 2 }
 0x162   : > { %s428_s23 = scalar_lea.sflag [#allocation4], %s427_s4 }
 0x163   : > { %p550_p10 = pnand %p1034_p9, %p849_p12 }
 0x165   : > { %p551_p1 = pneg %p550_p10 }
 0x167   : > { %747 = dma.done.wait (%p551_p1), %s428_s23, 768  }
 0x168   : > { %749 = vsyncadd (%p551_p1), %s428_s23, 4294966528  ;;  %p17_p2 = scmp.ge.s32.totalorder %s818_s18, 4   ;;  %s1035_s12 = smov %s756_s13 }
 0x169   : > { %s1036_s13 = smov %s760_s14  ;;  %s1037_s14 = smov %s830_s21 }
 0x16a   : > { %s1038_s15 = smov %s818_s18  ;;  %19 = sbr.rel (!%p17_p2) target bundleno = 6 (0x6), region = 85 }
 0x16f   :  { %434 = vsyncpa [#allocation3], 1 }
 0x170   :  { %436 = vsyncpa [#allocation3 + $0x1], 1 }
 0x171   :  { %437 = vsyncpa [#allocation6], 1 }
 0x172   :  { %438 = vsyncpa [#allocation4], 1 }
 0x173   :  { %440 = vsyncpa [#allocation4 + $0x1], 1 }

</bundles_post_ra>
